<compile_context>
chip_gen: v5e
topology: v5e:2x2
jax: 0.10.0
libtpu: 0.0.40
codegen_flags: <defaults>
</compile_context>

<pallas_src>
import math

import jax
import jax.numpy as jnp
from jax.experimental import pallas as pl
from jax.experimental.pallas import tpu as pltpu


# --------------------------------------------------------------------------
# PE table (mirrors the PyTorch buffer construction, sliced to seq length T)
# --------------------------------------------------------------------------
def _make_pe_table(t, d, dtype):
    position = jnp.arange(t, dtype=jnp.float32)[:, None]
    div_term = jnp.exp(
        jnp.arange(0, d, 2, dtype=jnp.float32) * (-math.log(10000.0) / d))
    pe = jnp.zeros((t, d), jnp.float32)
    pe = pe.at[:, 0::2].set(jnp.sin(position * div_term))
    pe = pe.at[:, 1::2].set(jnp.cos(position * div_term))
    return pe.astype(dtype)


# --------------------------------------------------------------------------
# Kernel: pure elementwise add (pe row broadcasts over the sublane axis)
# --------------------------------------------------------------------------
def _add_pe_kernel(x_ref, pe_ref, o_ref):
    # x_ref: (bm, bn), pe_ref: (1, bn) -> broadcast add along sublanes.
    o_ref[...] = x_ref[...] + pe_ref[...]


def _pick_block(rows, cols, itemsize, max_block_bytes=2 << 20):
    """Pick (bm, bn) respecting the (8, 128) tiling rule and a VMEM budget."""
    # Sublane dim: multiple of 8 when possible, else must be the full extent
    # (typical here: rows == batch, which is small).
    if rows % 8 == 0:
        bm = min(rows, 512)
    else:
        bm = rows
    # Lane dim: as wide as the byte budget allows (lane-dense stores), else
    # it must be the full extent.
    if cols % 128 == 0:
        budget_bn = max(128, (max_block_bytes // (bm * itemsize)) // 128 * 128)
        bn = min(cols, budget_bn)
    else:
        bn = cols
    # If still over budget (lane dim forced to full extent), shrink the
    # sublane tile — this keeps lane-dense stores.
    while bm * bn * itemsize > max_block_bytes and rows % 8 == 0 and bm > 8:
        bm = max(8, (bm // 2) // 8 * 8)
    return bm, bn


def _add_pe_2d(x2, pe2):
    rows, cols = x2.shape
    itemsize = x2.dtype.itemsize
    bm, bn = _pick_block(rows, cols, itemsize)

    # Grid: column tiles outer, row tiles inner -> the pe block index is
    # constant across the inner axis, so Pallas keeps it VMEM-resident.
    grid = (pl.cdiv(cols, bn), pl.cdiv(rows, bm))

    return pl.pallas_call(
        _add_pe_kernel,
        out_shape=jax.ShapeDtypeStruct((rows, cols), x2.dtype),
        grid=grid,
        in_specs=[
            pl.BlockSpec((bm, bn), lambda ci, ri: (ri, ci)),   # x
            pl.BlockSpec((1, bn), lambda ci, ri: (0, ci)),     # pe (resident)
        ],
        out_specs=pl.BlockSpec((bm, bn), lambda ci, ri: (ri, ci)),
        compiler_params=pltpu.CompilerParams(
            dimension_semantics=("parallel", "parallel")),
        cost_estimate=pl.CostEstimate(
            flops=rows * cols,
            transcendentals=0,
            bytes_accessed=(2 * rows * cols + cols) * itemsize),
    )(x2, pe2)


# --------------------------------------------------------------------------
# Public wrapper: x [batch, seq, dim] -> [batch, seq, dim]
# (the PyTorch forward slices pe with x.shape[1], i.e. axis 1 is the seq axis
#  and pe broadcasts over axis 0)
# --------------------------------------------------------------------------
def positional_encoding(x, *, dropout_p=0.1, max_len=5000):
    del dropout_p  # eval mode: nn.Dropout is the identity
    b, t, d = x.shape
    assert t <= max_len, "sequence length exceeds max_len"
    # PE table in x's dtype (bf16 add on v6e/v7x; exact for the f32 test).
    pe = _make_pe_table(t, d, x.dtype)

    # Flatten (T, D) into one lane-dense axis:
    #   x[b, t, d] + pe[t, d] == x_flat[b, t*D + d] + pe_flat[t*D + d].
    x2 = x.reshape(b, t * d)
    pe2 = pe.reshape(1, t * d)
    out2 = _add_pe_2d(x2, pe2)
    return out2.reshape(b, t, d)


# --------------------------------------------------------------------------
# Pure-JAX reference mirroring the PyTorch module
# --------------------------------------------------------------------------
def _reference(x):
    b, t, d = x.shape
    position = jnp.arange(t, dtype=jnp.float32)[:, None]
    div_term = jnp.exp(
        jnp.arange(0, d, 2, dtype=jnp.float32) * (-math.log(10000.0) / d))
    pe = jnp.zeros((t, d), jnp.float32)
    pe = pe.at[:, 0::2].set(jnp.sin(position * div_term))
    pe = pe.at[:, 1::2].set(jnp.cos(position * div_term))
    return (x.astype(jnp.float32) + pe[None]).astype(x.dtype)


if __name__ == "__main__":
    key = jax.random.PRNGKey(0)
    B, T, D = 2, 8, 32
    x = jax.random.normal(key, (B, T, D), dtype=jnp.float32)

    out = positional_encoding(x)
    out = jax.block_until_ready(out)

    ref = _reference(x)
    assert out.shape == (B, T, D) and out.dtype == x.dtype
    assert jnp.allclose(out, ref, atol=1e-5, rtol=1e-5), "mismatch vs reference"

    print("KERNEL_OK")
</pallas_src>

<mosaic_0001>
module attributes {stable_mosaic.version = 11 : i64} {
  func.func @_add_pe_kernel(%arg0: i32, %arg1: i32, %arg2: memref<2x256xf32, #tpu.memory_space<vmem>>, %arg3: memref<1x256xf32, #tpu.memory_space<vmem>>, %arg4: memref<2x256xf32, #tpu.memory_space<vmem>>) attributes {dimension_semantics = [#tpu.dimension_semantics<parallel>, #tpu.dimension_semantics<parallel>], iteration_bounds = array<i64: 1, 1>, scalar_prefetch = 0 : i64, scratch_operands = 0 : i64, tpu.core_type = #tpu.core_type<tc>, window_params = [{transform_indices = @transform_0, window_bounds = array<i64: 2, 256>}, {transform_indices = @transform_1, window_bounds = array<i64: 1, 256>}, {transform_indices = @transform_2, window_bounds = array<i64: 2, 256>}]} {
    %c0 = arith.constant 0 : index
    %c0_0 = arith.constant 0 : index
    %0 = vector.load %arg2[%c0, %c0_0] : memref<2x256xf32, #tpu.memory_space<vmem>>, vector<2x256xf32>
    %c0_1 = arith.constant 0 : index
    %c0_2 = arith.constant 0 : index
    %1 = vector.load %arg3[%c0_1, %c0_2] : memref<1x256xf32, #tpu.memory_space<vmem>>, vector<1x256xf32>
    %2 = vector.broadcast %1 : vector<1x256xf32> to vector<2x256xf32>
    %3 = arith.addf %0, %2 : vector<2x256xf32>
    %c0_3 = arith.constant 0 : index
    %c0_4 = arith.constant 0 : index
    %4 = vector.load %arg4[%c0_3, %c0_4] : memref<2x256xf32, #tpu.memory_space<vmem>>, vector<2x256xf32>
    tpu.vector_store %arg4[%c0_3, %c0_4], %3 {strides = array<i32>} : memref<2x256xf32, #tpu.memory_space<vmem>>, vector<2x256xf32>,
    return
  }
  func.func @transform_0(%arg0: i32, %arg1: i32) -> (i32, i32) {
    %c0_i32 = arith.constant 0 : i32
    return %arg1, %arg0 : i32, i32
  }
  func.func @transform_1(%arg0: i32, %arg1: i32) -> (i32, i32) {
    %c0_i32 = arith.constant 0 : i32
    %c0_i32_0 = arith.constant 0 : i32
    return %c0_i32, %arg0 : i32, i32
  }
  func.func @transform_2(%arg0: i32, %arg1: i32) -> (i32, i32) {
    %c0_i32 = arith.constant 0 : i32
    return %arg1, %arg0 : i32, i32
  }
}

</mosaic_0001>

<bundles_post_ra>
// kernel: tpu_custom_call.1
= control target key start
LH: loop header
LB: loop body
LE: loop exit
PB: predicated region body
PF: predicated region fallthrough
CT: control target
= control target key end

     0   :  { %7 = vsyncpa [#allocation3], 0  ;;  %s177_s0 = inlined_call_operand.hbm [shape: f32[2,256], index: 0, kind: input, shape index: {}]   ;;  %s178_s1 = inlined_call_operand.hbm [shape: f32[1,256], index: 1, kind: input, shape index: {}]   ;;  %s179_s2 = inlined_call_operand.hbm [shape: f32[2,256], index: 2, kind: output, shape index: {}]  }
   0x1   :  { %8 = vsyncpa [#allocation6], 0 }
   0x2   :  { %9 = vsyncpa [#allocation4], 0  ;;  %s15_s11 = sshll.u32 %s177_s0, 4  ;;  %s150_s12 = smov [#allocation2]   ;;  %s16_s11 = int_to_ptr.hbm [resolvable:$true] %s15_s11 }
   0x3   :  { %s17_s13 = sshll.u32 %s150_s12, 4  ;;  %s26_s16 = sshll.u32 %s178_s1, 4  ;;  %s18_s13 = int_to_ptr.vmem [resolvable:$true] %s17_s13  ;;  %s27_s16 = int_to_ptr.hbm [resolvable:$true] %s26_s16 }
   0x4   :  { %20 = dma.hbm_to_vmem [thread:$0]  %s16_s11, 64, %s18_s13, [#allocation3]  }
   0x5   :  { %s151_s17 = smov [#allocation5]  }
   0x6   :  { %s28_s18 = sshll.u32 %s151_s17, 4  ;;  %s29_s18 = int_to_ptr.vmem [resolvable:$true] %s28_s18 }
   0x7   :  { %31 = dma.hbm_to_vmem [thread:$0]  %s27_s16, 32, %s29_s18, [#allocation6]  }
   0x8   :  { %144 = dma.done.wait [#allocation3], 64  }
   0x9   :  { %145 = vsyncadd [#allocation3], 4294967232 }
   0xa   :  { %146 = dma.done.wait [#allocation6], 32  }
   0xb   :  { %147 = vsyncadd [#allocation6], 4294967264  ;;  %v41_v0 = vld [vmem:[#allocation5] sm:$0x3]  ;;  %vm46_vm0 = vcmask 1041408   ;;  %s152_s0 = smov [#allocation7]  }
   0xc   :  { %v43_v1 = vperm.slane %v41_v0, 0  ;;  %v44_v2 = vperm.slane %v41_v0, 1  ;;  %v40_v3 = vld [vmem:[#allocation2] sm:$0xf]  ;;  %s56_s19 = sshll.u32 %s152_s0, 4  ;;  %s58_s21 = sshll.u32 %s179_s2, 4  ;;  %s57_s19 = int_to_ptr.vmem [resolvable:$true] %s56_s19  ;;  %s59_s21 = int_to_ptr.hbm [resolvable:$true] %s58_s21 }
   0xe   :  { %v45_v4 = vrot.slane %v44_v2, 6 }
  0x10   :  { %v47_v5 = vsel %vm46_vm0, %v43_v1, %v45_v4 }
  0x11   :  { %v49_v6 = vadd.f32 %v47_v5, %v40_v3 }
  0x13   :  { %50 = vst [vmem:[#allocation7] sm:$0xf] %v49_v6 }
  0x14   :  { %61 = dma.vmem_to_hbm [thread:$0]  %s57_s19, 64, %s59_s21, [#allocation4]  }
  0x15   :  { %148 = dma.done.wait [#allocation4], 64  }
  0x16   :  { %149 = vsyncadd [#allocation4], 4294967232 }
  0x17   :  { %66 = vsyncpa [#allocation3], 1 }
  0x18   :  { %67 = vsyncpa [#allocation6], 1 }
  0x19   :  { %68 = vsyncpa [#allocation4], 1 }

</bundles_post_ra>
